<compile_context>
chip_gen: v6e
topology: v6e:2x2x1
jax: 0.10.0
libtpu: 0.0.40
codegen_flags: <defaults>
</compile_context>

<pallas_src>
import jax
import jax.numpy as jnp
import numpy as np
from jax import lax
from jax.experimental import pallas as pl
from jax.experimental.pallas import tpu as pltpu


def _cc_soft_kernel(f_re_ref, f_im_ref, g_re_ref, g_im_ref, w_ref,
                    o_re_ref, o_im_ref):
    # f_*_ref : (L, b, M)    f[b, l, m] transposed to l-major
    # g_*_ref : (L, b, MM)   g[b, l, n] transposed to l-major and tiled so that
    #                        g_*[l, b, kn] = g[b, l, kn % M]  (kn = k*M + n)
    # w_ref   : (L, M, MM)   W[l, m, k*M + n]   (real)
    # o_*_ref : (b, M, MM)   [b, m, k*M + n]
    L, b, M = f_re_ref.shape
    MM = w_ref.shape[2]

    def body(l, carry):
        acc_re, acc_im = carry
        fr = f_re_ref[l]                       # (b, M)   [b, m]
        fi = f_im_ref[l]
        gr = g_re_ref[l]                       # (b, MM)  [b, kn]
        gi = g_im_ref[l]
        w_l = w_ref[l]                         # (M, MM)  [m, kn]

        # A[b, m, kn] = f[b, l, m] * conj(g[b, l, n(kn)]); conj folded into signs.
        ar = fr[:, :, None] * gr[:, None, :] + fi[:, :, None] * gi[:, None, :]
        ai = fi[:, :, None] * gr[:, None, :] - fr[:, :, None] * gi[:, None, :]

        acc_re = acc_re + w_l[None, :, :] * ar
        acc_im = acc_im + w_l[None, :, :] * ai
        return acc_re, acc_im

    zero = jnp.zeros((b, M, MM), jnp.float32)
    acc_re, acc_im = lax.fori_loop(0, L, body, (zero, zero), unroll=True)

    o_re_ref[...] = acc_re
    o_im_ref[...] = acc_im


def ccsoft_forward(f, g, wigner_precompute):
    """f, g: complex64 (b, L, 2L-1); wigner_precompute: float32 (L, M, M, M)."""
    b, L, M = f.shape
    assert M == 2 * L - 1
    assert g.shape == (b, L, M)
    assert wigner_precompute.shape == (L, M, M, M)
    MM = M * M

    # l-major real/imag planes (tiny arrays; cheap XLA-side layout prep).
    f_re = jnp.transpose(jnp.real(f), (1, 0, 2)).astype(jnp.float32)    # (L, b, M)
    f_im = jnp.transpose(jnp.imag(f), (1, 0, 2)).astype(jnp.float32)
    g_re_t = jnp.transpose(jnp.real(g), (1, 0, 2)).astype(jnp.float32)  # (L, b, M)
    g_im_t = jnp.transpose(jnp.imag(g), (1, 0, 2)).astype(jnp.float32)
    # Pre-tile g along kn so the in-kernel broadcast over k is a plain lane op.
    g_re = jnp.tile(g_re_t, (1, 1, M))                                  # (L, b, MM)
    g_im = jnp.tile(g_im_t, (1, 1, M))
    # Lane-dense W: flatten (k, n) -> kn (pure contiguous reshape).
    w_flat = wigner_precompute.astype(jnp.float32).reshape(L, M, MM)    # (L, M, MM)

    out_re, out_im = pl.pallas_call(
        _cc_soft_kernel,
        out_shape=(jax.ShapeDtypeStruct((b, M, MM), jnp.float32),
                   jax.ShapeDtypeStruct((b, M, MM), jnp.float32)),
        grid_spec=pltpu.PrefetchScalarGridSpec(
            num_scalar_prefetch=0,
            grid=(1,),  # whole problem in one invocation at these sizes
            in_specs=[
                pl.BlockSpec((L, b, M), lambda i: (0, 0, 0)),    # f_re
                pl.BlockSpec((L, b, M), lambda i: (0, 0, 0)),    # f_im
                pl.BlockSpec((L, b, MM), lambda i: (0, 0, 0)),   # g_re (tiled)
                pl.BlockSpec((L, b, MM), lambda i: (0, 0, 0)),   # g_im (tiled)
                pl.BlockSpec((L, M, MM), lambda i: (0, 0, 0)),   # W
            ],
            out_specs=[pl.BlockSpec((b, M, MM), lambda i: (0, 0, 0)),
                       pl.BlockSpec((b, M, MM), lambda i: (0, 0, 0))],
        ),
        compiler_params=pltpu.CompilerParams(
            dimension_semantics=("arbitrary",)),
    )(f_re, f_im, g_re, g_im, w_flat)

    # (b, M, MM) -> complex (b, M, M, M): free contiguous reshape, no transposes.
    cc_harm = (out_re + 1j * out_im).reshape(b, M, M, M).astype(jnp.complex64)

    # TODO(synk): 3-D inverse FFT kept in plain JAX (no clean Pallas FFT primitive).
    return jnp.fft.ifftn(cc_harm, axes=(-3, -2, -1))


def make_wigner_precompute(L, key):
    """Deterministic synthetic stand-in for wigner_d_SOFT_weights(L):
    real (L, 2L-1, 2L-1) array, masked to the usual |m|<=l band structure,
    then einsum('lmk,lkn->lmkn') as in CCSOFT.__init__ (imag part is zero)."""
    M = 2 * L - 1
    d = jax.random.normal(key, (L, M, M), dtype=jnp.float32)
    l_idx = jnp.arange(L)[:, None, None]
    m_idx = jnp.abs(jnp.arange(M) - (L - 1))
    mask = (m_idx[None, :, None] <= l_idx) & (m_idx[None, None, :] <= l_idx)
    d = d * mask.astype(jnp.float32)
    return jnp.einsum('lmk,lkn->lmkn', d, d)  # (L, M, M, M), float32


if __name__ == "__main__":
    L = 4
    b = 2
    M = 2 * L - 1  # 7

    key = jax.random.PRNGKey(0)
    k_w, k_fr, k_fi, k_gr, k_gi = jax.random.split(key, 5)

    W = make_wigner_precompute(L, k_w)
    f = (jax.random.normal(k_fr, (b, L, M)) +
         1j * jax.random.normal(k_fi, (b, L, M))).astype(jnp.complex64)
    g = (jax.random.normal(k_gr, (b, L, M)) +
         1j * jax.random.normal(k_gi, (b, L, M))).astype(jnp.complex64)

    cc = jax.block_until_ready(jax.jit(ccsoft_forward)(f, g, W))

    # Pure-JAX reference (mirrors the PyTorch forward exactly).
    f_outer_g = jnp.einsum('blm,bln->blmn', f, jnp.conj(g))
    cc_harm_ref = jnp.einsum('lmkn,blmn->bmkn',
                             W.astype(jnp.complex64), f_outer_g)
    cc_ref = jnp.fft.ifftn(cc_harm_ref, axes=(-3, -2, -1))

    np.testing.assert_allclose(np.asarray(cc), np.asarray(cc_ref),
                               rtol=1e-4, atol=1e-4)
    assert cc.shape == (b, M, M, M)
    print("KERNEL_OK")
</pallas_src>

<mosaic_0001>
module attributes {stable_mosaic.version = 11 : i64} {
  func.func @_cc_soft_kernel(%arg0: i32, %arg1: memref<4x2x7xf32, #tpu.memory_space<vmem>>, %arg2: memref<4x2x7xf32, #tpu.memory_space<vmem>>, %arg3: memref<4x2x49xf32, #tpu.memory_space<vmem>>, %arg4: memref<4x2x49xf32, #tpu.memory_space<vmem>>, %arg5: memref<4x7x49xf32, #tpu.memory_space<vmem>>, %arg6: memref<2x7x49xf32, #tpu.memory_space<vmem>>, %arg7: memref<2x7x49xf32, #tpu.memory_space<vmem>>) attributes {dimension_semantics = [#tpu.dimension_semantics<arbitrary>], iteration_bounds = array<i64: 1>, scalar_prefetch = 0 : i64, scratch_operands = 0 : i64, tpu.core_type = #tpu.core_type<tc>, window_params = [{pipeline_mode = #tpu.pipeline_mode<synchronous>, transform_indices = @transform_0, window_bounds = array<i64: 4, 2, 7>}, {pipeline_mode = #tpu.pipeline_mode<synchronous>, transform_indices = @transform_1, window_bounds = array<i64: 4, 2, 7>}, {pipeline_mode = #tpu.pipeline_mode<synchronous>, transform_indices = @transform_2, window_bounds = array<i64: 4, 2, 49>}, {pipeline_mode = #tpu.pipeline_mode<synchronous>, transform_indices = @transform_3, window_bounds = array<i64: 4, 2, 49>}, {pipeline_mode = #tpu.pipeline_mode<synchronous>, transform_indices = @transform_4, window_bounds = array<i64: 4, 7, 49>}, {pipeline_mode = #tpu.pipeline_mode<synchronous>, transform_indices = @transform_5, window_bounds = array<i64: 2, 7, 49>}, {pipeline_mode = #tpu.pipeline_mode<synchronous>, transform_indices = @transform_6, window_bounds = array<i64: 2, 7, 49>}]} {
    %cst = arith.constant 0.000000e+00 : f32
    %0 = vector.broadcast %cst : f32 to vector<2x7x49xf32>
    %c0_i32 = arith.constant 0 : i32
    %1 = arith.index_cast %c0_i32 : i32 to index
    %c0 = arith.constant 0 : index
    %c0_0 = arith.constant 0 : index
    %2 = vector.load %arg1[%1, %c0, %c0_0] : memref<4x2x7xf32, #tpu.memory_space<vmem>>, vector<1x2x7xf32>
    %3 = vector.shape_cast %2 : vector<1x2x7xf32> to vector<2x7xf32>
    %4 = arith.index_cast %c0_i32 : i32 to index
    %c0_1 = arith.constant 0 : index
    %c0_2 = arith.constant 0 : index
    %5 = vector.load %arg2[%4, %c0_1, %c0_2] : memref<4x2x7xf32, #tpu.memory_space<vmem>>, vector<1x2x7xf32>
    %6 = vector.shape_cast %5 : vector<1x2x7xf32> to vector<2x7xf32>
    %7 = arith.index_cast %c0_i32 : i32 to index
    %c0_3 = arith.constant 0 : index
    %c0_4 = arith.constant 0 : index
    %8 = vector.load %arg3[%7, %c0_3, %c0_4] : memref<4x2x49xf32, #tpu.memory_space<vmem>>, vector<1x2x49xf32>
    %9 = vector.shape_cast %8 : vector<1x2x49xf32> to vector<2x49xf32>
    %10 = arith.index_cast %c0_i32 : i32 to index
    %c0_5 = arith.constant 0 : index
    %c0_6 = arith.constant 0 : index
    %11 = vector.load %arg4[%10, %c0_5, %c0_6] : memref<4x2x49xf32, #tpu.memory_space<vmem>>, vector<1x2x49xf32>
    %12 = vector.shape_cast %11 : vector<1x2x49xf32> to vector<2x49xf32>
    %13 = arith.index_cast %c0_i32 : i32 to index
    %c0_7 = arith.constant 0 : index
    %c0_8 = arith.constant 0 : index
    %14 = vector.load %arg5[%13, %c0_7, %c0_8] : memref<4x7x49xf32, #tpu.memory_space<vmem>>, vector<1x7x49xf32>
    %15 = vector.shape_cast %14 : vector<1x7x49xf32> to vector<7x49xf32>
    %16 = vector.shape_cast %3 : vector<2x7xf32> to vector<2x7x1xf32>
    %17 = vector.shape_cast %9 : vector<2x49xf32> to vector<2x1x49xf32>
    %18 = vector.broadcast %16 : vector<2x7x1xf32> to vector<2x7x49xf32>
    %19 = vector.broadcast %17 : vector<2x1x49xf32> to vector<2x7x49xf32>
    %20 = arith.mulf %18, %19 : vector<2x7x49xf32>
    %21 = vector.shape_cast %6 : vector<2x7xf32> to vector<2x7x1xf32>
    %22 = vector.shape_cast %12 : vector<2x49xf32> to vector<2x1x49xf32>
    %23 = vector.broadcast %21 : vector<2x7x1xf32> to vector<2x7x49xf32>
    %24 = vector.broadcast %22 : vector<2x1x49xf32> to vector<2x7x49xf32>
    %25 = arith.mulf %23, %24 : vector<2x7x49xf32>
    %26 = arith.addf %20, %25 : vector<2x7x49xf32>
    %27 = vector.shape_cast %6 : vector<2x7xf32> to vector<2x7x1xf32>
    %28 = vector.shape_cast %9 : vector<2x49xf32> to vector<2x1x49xf32>
    %29 = vector.broadcast %27 : vector<2x7x1xf32> to vector<2x7x49xf32>
    %30 = vector.broadcast %28 : vector<2x1x49xf32> to vector<2x7x49xf32>
    %31 = arith.mulf %29, %30 : vector<2x7x49xf32>
    %32 = vector.shape_cast %3 : vector<2x7xf32> to vector<2x7x1xf32>
    %33 = vector.shape_cast %12 : vector<2x49xf32> to vector<2x1x49xf32>
    %34 = vector.broadcast %32 : vector<2x7x1xf32> to vector<2x7x49xf32>
    %35 = vector.broadcast %33 : vector<2x1x49xf32> to vector<2x7x49xf32>
    %36 = arith.mulf %34, %35 : vector<2x7x49xf32>
    %37 = arith.subf %31, %36 : vector<2x7x49xf32>
    %38 = vector.shape_cast %15 : vector<7x49xf32> to vector<1x7x49xf32>
    %39 = vector.broadcast %38 : vector<1x7x49xf32> to vector<2x7x49xf32>
    %40 = arith.mulf %39, %26 : vector<2x7x49xf32>
    %41 = arith.addf %0, %40 : vector<2x7x49xf32>
    %42 = vector.shape_cast %15 : vector<7x49xf32> to vector<1x7x49xf32>
    %43 = vector.broadcast %42 : vector<1x7x49xf32> to vector<2x7x49xf32>
    %44 = arith.mulf %43, %37 : vector<2x7x49xf32>
    %45 = arith.addf %0, %44 : vector<2x7x49xf32>
    %c1_i32 = arith.constant 1 : i32
    %46 = arith.index_cast %c1_i32 : i32 to index
    %c0_9 = arith.constant 0 : index
    %c0_10 = arith.constant 0 : index
    %47 = vector.load %arg1[%46, %c0_9, %c0_10] : memref<4x2x7xf32, #tpu.memory_space<vmem>>, vector<1x2x7xf32>
    %48 = vector.shape_cast %47 : vector<1x2x7xf32> to vector<2x7xf32>
    %49 = arith.index_cast %c1_i32 : i32 to index
    %c0_11 = arith.constant 0 : index
    %c0_12 = arith.constant 0 : index
    %50 = vector.load %arg2[%49, %c0_11, %c0_12] : memref<4x2x7xf32, #tpu.memory_space<vmem>>, vector<1x2x7xf32>
    %51 = vector.shape_cast %50 : vector<1x2x7xf32> to vector<2x7xf32>
    %52 = arith.index_cast %c1_i32 : i32 to index
    %c0_13 = arith.constant 0 : index
    %c0_14 = arith.constant 0 : index
    %53 = vector.load %arg3[%52, %c0_13, %c0_14] : memref<4x2x49xf32, #tpu.memory_space<vmem>>, vector<1x2x49xf32>
    %54 = vector.shape_cast %53 : vector<1x2x49xf32> to vector<2x49xf32>
    %55 = arith.index_cast %c1_i32 : i32 to index
    %c0_15 = arith.constant 0 : index
    %c0_16 = arith.constant 0 : index
    %56 = vector.load %arg4[%55, %c0_15, %c0_16] : memref<4x2x49xf32, #tpu.memory_space<vmem>>, vector<1x2x49xf32>
    %57 = vector.shape_cast %56 : vector<1x2x49xf32> to vector<2x49xf32>
    %58 = arith.index_cast %c1_i32 : i32 to index
    %c0_17 = arith.constant 0 : index
    %c0_18 = arith.constant 0 : index
    %59 = vector.load %arg5[%58, %c0_17, %c0_18] : memref<4x7x49xf32, #tpu.memory_space<vmem>>, vector<1x7x49xf32>
    %60 = vector.shape_cast %59 : vector<1x7x49xf32> to vector<7x49xf32>
    %61 = vector.shape_cast %48 : vector<2x7xf32> to vector<2x7x1xf32>
    %62 = vector.shape_cast %54 : vector<2x49xf32> to vector<2x1x49xf32>
    %63 = vector.broadcast %61 : vector<2x7x1xf32> to vector<2x7x49xf32>
    %64 = vector.broadcast %62 : vector<2x1x49xf32> to vector<2x7x49xf32>
    %65 = arith.mulf %63, %64 : vector<2x7x49xf32>
    %66 = vector.shape_cast %51 : vector<2x7xf32> to vector<2x7x1xf32>
    %67 = vector.shape_cast %57 : vector<2x49xf32> to vector<2x1x49xf32>
    %68 = vector.broadcast %66 : vector<2x7x1xf32> to vector<2x7x49xf32>
    %69 = vector.broadcast %67 : vector<2x1x49xf32> to vector<2x7x49xf32>
    %70 = arith.mulf %68, %69 : vector<2x7x49xf32>
    %71 = arith.addf %65, %70 : vector<2x7x49xf32>
    %72 = vector.shape_cast %51 : vector<2x7xf32> to vector<2x7x1xf32>
    %73 = vector.shape_cast %54 : vector<2x49xf32> to vector<2x1x49xf32>
    %74 = vector.broadcast %72 : vector<2x7x1xf32> to vector<2x7x49xf32>
    %75 = vector.broadcast %73 : vector<2x1x49xf32> to vector<2x7x49xf32>
    %76 = arith.mulf %74, %75 : vector<2x7x49xf32>
    %77 = vector.shape_cast %48 : vector<2x7xf32> to vector<2x7x1xf32>
    %78 = vector.shape_cast %57 : vector<2x49xf32> to vector<2x1x49xf32>
    %79 = vector.broadcast %77 : vector<2x7x1xf32> to vector<2x7x49xf32>
    %80 = vector.broadcast %78 : vector<2x1x49xf32> to vector<2x7x49xf32>
    %81 = arith.mulf %79, %80 : vector<2x7x49xf32>
    %82 = arith.subf %76, %81 : vector<2x7x49xf32>
    %83 = vector.shape_cast %60 : vector<7x49xf32> to vector<1x7x49xf32>
    %84 = vector.broadcast %83 : vector<1x7x49xf32> to vector<2x7x49xf32>
    %85 = arith.mulf %84, %71 : vector<2x7x49xf32>
    %86 = arith.addf %41, %85 : vector<2x7x49xf32>
    %87 = vector.shape_cast %60 : vector<7x49xf32> to vector<1x7x49xf32>
    %88 = vector.broadcast %87 : vector<1x7x49xf32> to vector<2x7x49xf32>
    %89 = arith.mulf %88, %82 : vector<2x7x49xf32>
    %90 = arith.addf %45, %89 : vector<2x7x49xf32>
    %c2_i32 = arith.constant 2 : i32
    %91 = arith.index_cast %c2_i32 : i32 to index
    %c0_19 = arith.constant 0 : index
    %c0_20 = arith.constant 0 : index
    %92 = vector.load %arg1[%91, %c0_19, %c0_20] : memref<4x2x7xf32, #tpu.memory_space<vmem>>, vector<1x2x7xf32>
    %93 = vector.shape_cast %92 : vector<1x2x7xf32> to vector<2x7xf32>
    %94 = arith.index_cast %c2_i32 : i32 to index
    %c0_21 = arith.constant 0 : index
    %c0_22 = arith.constant 0 : index
    %95 = vector.load %arg2[%94, %c0_21, %c0_22] : memref<4x2x7xf32, #tpu.memory_space<vmem>>, vector<1x2x7xf32>
    %96 = vector.shape_cast %95 : vector<1x2x7xf32> to vector<2x7xf32>
    %97 = arith.index_cast %c2_i32 : i32 to index
    %c0_23 = arith.constant 0 : index
    %c0_24 = arith.constant 0 : index
    %98 = vector.load %arg3[%97, %c0_23, %c0_24] : memref<4x2x49xf32, #tpu.memory_space<vmem>>, vector<1x2x49xf32>
    %99 = vector.shape_cast %98 : vector<1x2x49xf32> to vector<2x49xf32>
    %100 = arith.index_cast %c2_i32 : i32 to index
    %c0_25 = arith.constant 0 : index
    %c0_26 = arith.constant 0 : index
    %101 = vector.load %arg4[%100, %c0_25, %c0_26] : memref<4x2x49xf32, #tpu.memory_space<vmem>>, vector<1x2x49xf32>
    %102 = vector.shape_cast %101 : vector<1x2x49xf32> to vector<2x49xf32>
    %103 = arith.index_cast %c2_i32 : i32 to index
    %c0_27 = arith.constant 0 : index
    %c0_28 = arith.constant 0 : index
    %104 = vector.load %arg5[%103, %c0_27, %c0_28] : memref<4x7x49xf32, #tpu.memory_space<vmem>>, vector<1x7x49xf32>
    %105 = vector.shape_cast %104 : vector<1x7x49xf32> to vector<7x49xf32>
    %106 = vector.shape_cast %93 : vector<2x7xf32> to vector<2x7x1xf32>
    %107 = vector.shape_cast %99 : vector<2x49xf32> to vector<2x1x49xf32>
    %108 = vector.broadcast %106 : vector<2x7x1xf32> to vector<2x7x49xf32>
    %109 = vector.broadcast %107 : vector<2x1x49xf32> to vector<2x7x49xf32>
    %110 = arith.mulf %108, %109 : vector<2x7x49xf32>
    %111 = vector.shape_cast %96 : vector<2x7xf32> to vector<2x7x1xf32>
    %112 = vector.shape_cast %102 : vector<2x49xf32> to vector<2x1x49xf32>
    %113 = vector.broadcast %111 : vector<2x7x1xf32> to vector<2x7x49xf32>
    %114 = vector.broadcast %112 : vector<2x1x49xf32> to vector<2x7x49xf32>
    %115 = arith.mulf %113, %114 : vector<2x7x49xf32>
    %116 = arith.addf %110, %115 : vector<2x7x49xf32>
    %117 = vector.shape_cast %96 : vector<2x7xf32> to vector<2x7x1xf32>
    %118 = vector.shape_cast %99 : vector<2x49xf32> to vector<2x1x49xf32>
    %119 = vector.broadcast %117 : vector<2x7x1xf32> to vector<2x7x49xf32>
    %120 = vector.broadcast %118 : vector<2x1x49xf32> to vector<2x7x49xf32>
    %121 = arith.mulf %119, %120 : vector<2x7x49xf32>
    %122 = vector.shape_cast %93 : vector<2x7xf32> to vector<2x7x1xf32>
    %123 = vector.shape_cast %102 : vector<2x49xf32> to vector<2x1x49xf32>
    %124 = vector.broadcast %122 : vector<2x7x1xf32> to vector<2x7x49xf32>
    %125 = vector.broadcast %123 : vector<2x1x49xf32> to vector<2x7x49xf32>
    %126 = arith.mulf %124, %125 : vector<2x7x49xf32>
    %127 = arith.subf %121, %126 : vector<2x7x49xf32>
    %128 = vector.shape_cast %105 : vector<7x49xf32> to vector<1x7x49xf32>
    %129 = vector.broadcast %128 : vector<1x7x49xf32> to vector<2x7x49xf32>
    %130 = arith.mulf %129, %116 : vector<2x7x49xf32>
    %131 = arith.addf %86, %130 : vector<2x7x49xf32>
    %132 = vector.shape_cast %105 : vector<7x49xf32> to vector<1x7x49xf32>
    %133 = vector.broadcast %132 : vector<1x7x49xf32> to vector<2x7x49xf32>
    %134 = arith.mulf %133, %127 : vector<2x7x49xf32>
    %135 = arith.addf %90, %134 : vector<2x7x49xf32>
    %c3_i32 = arith.constant 3 : i32
    %136 = arith.index_cast %c3_i32 : i32 to index
    %c0_29 = arith.constant 0 : index
    %c0_30 = arith.constant 0 : index
    %137 = vector.load %arg1[%136, %c0_29, %c0_30] : memref<4x2x7xf32, #tpu.memory_space<vmem>>, vector<1x2x7xf32>
    %138 = vector.shape_cast %137 : vector<1x2x7xf32> to vector<2x7xf32>
    %139 = arith.index_cast %c3_i32 : i32 to index
    %c0_31 = arith.constant 0 : index
    %c0_32 = arith.constant 0 : index
    %140 = vector.load %arg2[%139, %c0_31, %c0_32] : memref<4x2x7xf32, #tpu.memory_space<vmem>>, vector<1x2x7xf32>
    %141 = vector.shape_cast %140 : vector<1x2x7xf32> to vector<2x7xf32>
    %142 = arith.index_cast %c3_i32 : i32 to index
    %c0_33 = arith.constant 0 : index
    %c0_34 = arith.constant 0 : index
    %143 = vector.load %arg3[%142, %c0_33, %c0_34] : memref<4x2x49xf32, #tpu.memory_space<vmem>>, vector<1x2x49xf32>
    %144 = vector.shape_cast %143 : vector<1x2x49xf32> to vector<2x49xf32>
    %145 = arith.index_cast %c3_i32 : i32 to index
    %c0_35 = arith.constant 0 : index
    %c0_36 = arith.constant 0 : index
    %146 = vector.load %arg4[%145, %c0_35, %c0_36] : memref<4x2x49xf32, #tpu.memory_space<vmem>>, vector<1x2x49xf32>
    %147 = vector.shape_cast %146 : vector<1x2x49xf32> to vector<2x49xf32>
    %148 = arith.index_cast %c3_i32 : i32 to index
    %c0_37 = arith.constant 0 : index
    %c0_38 = arith.constant 0 : index
    %149 = vector.load %arg5[%148, %c0_37, %c0_38] : memref<4x7x49xf32, #tpu.memory_space<vmem>>, vector<1x7x49xf32>
    %150 = vector.shape_cast %149 : vector<1x7x49xf32> to vector<7x49xf32>
    %151 = vector.shape_cast %138 : vector<2x7xf32> to vector<2x7x1xf32>
    %152 = vector.shape_cast %144 : vector<2x49xf32> to vector<2x1x49xf32>
    %153 = vector.broadcast %151 : vector<2x7x1xf32> to vector<2x7x49xf32>
    %154 = vector.broadcast %152 : vector<2x1x49xf32> to vector<2x7x49xf32>
    %155 = arith.mulf %153, %154 : vector<2x7x49xf32>
    %156 = vector.shape_cast %141 : vector<2x7xf32> to vector<2x7x1xf32>
    %157 = vector.shape_cast %147 : vector<2x49xf32> to vector<2x1x49xf32>
    %158 = vector.broadcast %156 : vector<2x7x1xf32> to vector<2x7x49xf32>
    %159 = vector.broadcast %157 : vector<2x1x49xf32> to vector<2x7x49xf32>
    %160 = arith.mulf %158, %159 : vector<2x7x49xf32>
    %161 = arith.addf %155, %160 : vector<2x7x49xf32>
    %162 = vector.shape_cast %141 : vector<2x7xf32> to vector<2x7x1xf32>
    %163 = vector.shape_cast %144 : vector<2x49xf32> to vector<2x1x49xf32>
    %164 = vector.broadcast %162 : vector<2x7x1xf32> to vector<2x7x49xf32>
    %165 = vector.broadcast %163 : vector<2x1x49xf32> to vector<2x7x49xf32>
    %166 = arith.mulf %164, %165 : vector<2x7x49xf32>
    %167 = vector.shape_cast %138 : vector<2x7xf32> to vector<2x7x1xf32>
    %168 = vector.shape_cast %147 : vector<2x49xf32> to vector<2x1x49xf32>
    %169 = vector.broadcast %167 : vector<2x7x1xf32> to vector<2x7x49xf32>
    %170 = vector.broadcast %168 : vector<2x1x49xf32> to vector<2x7x49xf32>
    %171 = arith.mulf %169, %170 : vector<2x7x49xf32>
    %172 = arith.subf %166, %171 : vector<2x7x49xf32>
    %173 = vector.shape_cast %150 : vector<7x49xf32> to vector<1x7x49xf32>
    %174 = vector.broadcast %173 : vector<1x7x49xf32> to vector<2x7x49xf32>
    %175 = arith.mulf %174, %161 : vector<2x7x49xf32>
    %176 = arith.addf %131, %175 : vector<2x7x49xf32>
    %177 = vector.shape_cast %150 : vector<7x49xf32> to vector<1x7x49xf32>
    %178 = vector.broadcast %177 : vector<1x7x49xf32> to vector<2x7x49xf32>
    %179 = arith.mulf %178, %172 : vector<2x7x49xf32>
    %180 = arith.addf %135, %179 : vector<2x7x49xf32>
    %c4_i32 = arith.constant 4 : i32
    %c0_39 = arith.constant 0 : index
    %c0_40 = arith.constant 0 : index
    %c0_41 = arith.constant 0 : index
    %181 = vector.load %arg6[%c0_39, %c0_40, %c0_41] : memref<2x7x49xf32, #tpu.memory_space<vmem>>, vector<2x7x49xf32>
    tpu.vector_store %arg6[%c0_39, %c0_40, %c0_41], %176 {strides = array<i32>} : memref<2x7x49xf32, #tpu.memory_space<vmem>>, vector<2x7x49xf32>,
    %c0_42 = arith.constant 0 : index
    %c0_43 = arith.constant 0 : index
    %c0_44 = arith.constant 0 : index
    %182 = vector.load %arg7[%c0_42, %c0_43, %c0_44] : memref<2x7x49xf32, #tpu.memory_space<vmem>>, vector<2x7x49xf32>
    tpu.vector_store %arg7[%c0_42, %c0_43, %c0_44], %180 {strides = array<i32>} : memref<2x7x49xf32, #tpu.memory_space<vmem>>, vector<2x7x49xf32>,
    return
  }
  func.func @transform_0(%arg0: i32) -> (i32, i32, i32) {
    %c0_i32 = arith.constant 0 : i32
    %c0_i32_0 = arith.constant 0 : i32
    %c0_i32_1 = arith.constant 0 : i32
    %c0_i32_2 = arith.constant 0 : i32
    return %c0_i32, %c0_i32_0, %c0_i32_1 : i32, i32, i32
  }
  func.func @transform_1(%arg0: i32) -> (i32, i32, i32) {
    %c0_i32 = arith.constant 0 : i32
    %c0_i32_0 = arith.constant 0 : i32
    %c0_i32_1 = arith.constant 0 : i32
    %c0_i32_2 = arith.constant 0 : i32
    return %c0_i32, %c0_i32_0, %c0_i32_1 : i32, i32, i32
  }
  func.func @transform_2(%arg0: i32) -> (i32, i32, i32) {
    %c0_i32 = arith.constant 0 : i32
    %c0_i32_0 = arith.constant 0 : i32
    %c0_i32_1 = arith.constant 0 : i32
    %c0_i32_2 = arith.constant 0 : i32
    return %c0_i32, %c0_i32_0, %c0_i32_1 : i32, i32, i32
  }
  func.func @transform_3(%arg0: i32) -> (i32, i32, i32) {
    %c0_i32 = arith.constant 0 : i32
    %c0_i32_0 = arith.constant 0 : i32
    %c0_i32_1 = arith.constant 0 : i32
    %c0_i32_2 = arith.constant 0 : i32
    return %c0_i32, %c0_i32_0, %c0_i32_1 : i32, i32, i32
  }
  func.func @transform_4(%arg0: i32) -> (i32, i32, i32) {
    %c0_i32 = arith.constant 0 : i32
    %c0_i32_0 = arith.constant 0 : i32
    %c0_i32_1 = arith.constant 0 : i32
    %c0_i32_2 = arith.constant 0 : i32
    return %c0_i32, %c0_i32_0, %c0_i32_1 : i32, i32, i32
  }
  func.func @transform_5(%arg0: i32) -> (i32, i32, i32) {
    %c0_i32 = arith.constant 0 : i32
    %c0_i32_0 = arith.constant 0 : i32
    %c0_i32_1 = arith.constant 0 : i32
    %c0_i32_2 = arith.constant 0 : i32
    return %c0_i32, %c0_i32_0, %c0_i32_1 : i32, i32, i32
  }
  func.func @transform_6(%arg0: i32) -> (i32, i32, i32) {
    %c0_i32 = arith.constant 0 : i32
    %c0_i32_0 = arith.constant 0 : i32
    %c0_i32_1 = arith.constant 0 : i32
    %c0_i32_2 = arith.constant 0 : i32
    return %c0_i32, %c0_i32_0, %c0_i32_1 : i32, i32, i32
  }
}

</mosaic_0001>

<bundles_post_ra>
// kernel: custom-call.2
= control target key start
LH: loop header
LB: loop body
LE: loop exit
PB: predicated region body
PF: predicated region fallthrough
CT: control target
= control target key end

     0   :  { %2 = vsyncpa [#allocation0], 0  ;;  %s47_s0 = inlined_call_operand.hbm [shape: c64[2,4,7], index: 0, kind: input, shape index: {}]   ;;  %s48_s1 = inlined_call_operand.vmem [shape: f32[2,4,7], index: 1, kind: output, shape index: {}]  }
   0x1   :  { %s3_s8 = sshll.u32 %s48_s1, 4  ;;  %s4_s8 = int_to_ptr.vmem [resolvable:$true] %s3_s8 }
   0x2   :  { %s17_s9 = scalar_lea.vmem %s4_s8, 128  ;;  %p22_p1 = scmp.lt.s32.totalorder %s4_s8, %s4_s8 }
   0x3   :  { %p18_p0 = scmp.ne.s32.totalorder %s4_s8, %s17_s9  ;;  %p23_p2 = scmp.lt.s32.totalorder %s17_s9, %s17_s9 }
   0x5   :  { %p24_p3 = por %p23_p2, %p22_p1 }
   0x7   :  { %p25_p4 = pnand %p24_p3, %p18_p0 }
   0x9   :  { %28 = shalt.err (!%p25_p4)  }
   0xa   :  { %6 = dma.hbm_to_vmem [thread:$0]  %s47_s0, 128, %s4_s8, [#allocation0] }
   0xb   :  { %29 = dma.done.wait [#allocation0], 128  }
   0xc   :  { %30 = vsyncadd [#allocation0], 4294967168 }
   0xd   :  { %8 = vsyncpa [#allocation0], 1 }

// kernel: custom-call.3
= control target key start
LH: loop header
LB: loop body
LE: loop exit
PB: predicated region body
PF: predicated region fallthrough
CT: control target
= control target key end

     0   :  { %s51_s0 = inlined_call_operand.hbm [shape: c64[2,4,7], index: 0, kind: input, shape index: {}]   ;;  %s52_s1 = inlined_call_operand.vmem [shape: f32[2,4,7], index: 1, kind: output, shape index: {}]  }
   0x1   :  { %s2_s8 = scalar_lea.hbm %s51_s0, 128 }
   0x2   :  { %3 = vsyncpa [#allocation0], 0  ;;  %s4_s11 = sshll.u32 %s52_s1, 4  ;;  %s5_s11 = int_to_ptr.vmem [resolvable:$true] %s4_s11 }
   0x3   :  { %s20_s12 = scalar_lea.vmem %s5_s11, 128  ;;  %p25_p1 = scmp.lt.s32.totalorder %s5_s11, %s5_s11 }
   0x4   :  { %p21_p0 = scmp.ne.s32.totalorder %s5_s11, %s20_s12  ;;  %p26_p2 = scmp.lt.s32.totalorder %s20_s12, %s20_s12 }
   0x6   :  { %p27_p3 = por %p26_p2, %p25_p1 }
   0x8   :  { %p28_p4 = pnand %p27_p3, %p21_p0 }
   0xa   :  { %31 = shalt.err (!%p28_p4)  }
   0xb   :  { %7 = dma.hbm_to_vmem [thread:$0]  %s2_s8, 128, %s5_s11, [#allocation0] }
   0xc   :  { %33 = dma.done.wait [#allocation0], 128  }
   0xd   :  { %34 = vsyncadd [#allocation0], 4294967168 }
   0xe   :  { %9 = vsyncpa [#allocation0], 1 }

// kernel: custom-call
= control target key start
LH: loop header
LB: loop body
LE: loop exit
PB: predicated region body
PF: predicated region fallthrough
CT: control target
= control target key end

     0   :  { %s20_s0 = inlined_call_operand.vmem [shape: c64[2,4,7], index: 0, kind: input, shape index: {}]   ;;  %s21_s1 = inlined_call_operand.vmem [shape: f32[2,4,7], index: 1, kind: output, shape index: {}]  }
   0x1   :  { %v2_v0 = vld [vmem:[%s20_s0] sm:$0xff] }
   0x2   :  { %3 = vst [vmem:[%s21_s1] sm:$0xff] %v2_v0 }

// kernel: custom-call.1
= control target key start
LH: loop header
LB: loop body
LE: loop exit
PB: predicated region body
PF: predicated region fallthrough
CT: control target
= control target key end

     0   :  { %s22_s0 = inlined_call_operand.vmem [shape: c64[2,4,7], index: 0, kind: input, shape index: {}]   ;;  %s23_s1 = inlined_call_operand.vmem [shape: f32[2,4,7], index: 1, kind: output, shape index: {}]  }
   0x1   :  { %v5_v0 = vld [vmem:[%s22_s0 + $0x8] sm:$0xff] }
   0x2   :  { %4 = vst [vmem:[%s23_s1] sm:$0xff] %v5_v0 }

// kernel: tile.14
= control target key start
LH: loop header
LB: loop body
LE: loop exit
PB: predicated region body
PF: predicated region fallthrough
CT: control target
= control target key end

     0   :  { %vm4_vm0 = vcmask 1047556   ;;  %s161_s16 = smov 42   ;;  %s162_s19 = smov 28   ;;  %vm6_vm1 = vcmask 56320   ;;  %vm22_vm2 = vcmask 400720   ;;  %vm38_vm3 = vcmask 343320   ;;  %s238_s0 = inlined_call_operand.vmem [shape: f32[4,2,7,7], index: 0, kind: input, shape index: {}]   ;;  %s239_s1 = inlined_call_operand.vmem [shape: f32[4,2,49], index: 1, kind: output, shape index: {}]  }
   0x1   :  { %v140_v0 = vld [vmem:[%s238_s0 + $0x6] ss:$8 sm:$0xf]   ;;  %v144_v2 = vld [vmem:[%s238_s0 + $0x4] ss:$8 sm:$0xf]  }
   0x2   :  { %v141_v1 = vld [vmem:[%s238_s0 + $0x6] ss:$8 sm:$0xf0]   ;;  %v145_v4 = vld [vmem:[%s238_s0 + $0x4] ss:$8 sm:$0xf0]  }
   0x3   :  { %v19_v3 = vsel %vm4_vm0, %v141_v1, %v140_v0  ;;  %v142_v5 = vld [vmem:[%s238_s0 + $0x5] ss:$8 sm:$0xf]   ;;  %v51_v6 = vsel %vm4_vm0, %v145_v4, %v144_v2  ;;  %v146_v9 = vld [vmem:[%s238_s0 + $0x3] ss:$8 sm:$0xf]  }
   0x4   :  { %20 = vrot.lane.b32.xlu0 %v19_v3, %s161_s16  ;;  %v143_v7 = vld [vmem:[%s238_s0 + $0x5] ss:$8 sm:$0xf0]   ;;  %52 = vrot.lane.b32.xlu1 %v51_v6, %s162_s19  ;;  %v147_v10 = vld [vmem:[%s238_s0 + $0x3] ss:$8 sm:$0xf0]  }
   0x5   :  { %v35_v8 = vsel %vm4_vm0, %v143_v7, %v142_v5  ;;  %v67_v11 = vsel %vm4_vm0, %v147_v10, %v146_v9  ;;  %v148_v12 = vld [vmem:[%s238_s0 + $0x2] ss:$8 sm:$0xf]   ;;  %v150_v14 = vld [vmem:[%s238_s0 + $0x1] ss:$8 sm:$0xf]  }
   0x6   :  { %v149_v13 = vld [vmem:[%s238_s0 + $0x2] ss:$8 sm:$0xf0]   ;;  %s163_s30 = smov 35   ;;  %s164_s6 = smov 21   ;;  %vm54_vm4 = vcmask 285920  }
   0x7   :  { %v151_v15 = vld [vmem:[%s238_s0 + $0x1] ss:$8 sm:$0xf0]   ;;  %v2_v16 = vld [vmem:[%s238_s0] ss:$8 sm:$0xf]   ;;  %v83_v17 = vsel %vm4_vm0, %v149_v13, %v148_v12 }
   0x8   :  { %36 = vrot.lane.b32.xlu0 %v35_v8, %s163_s30  ;;  %68 = vrot.lane.b32.xlu1 %v67_v11, %s164_s6  ;;  %v3_v18 = vld [vmem:[%s238_s0] ss:$8 sm:$0xf0]   ;;  %v99_v19 = vsel %vm4_vm0, %v151_v15, %v150_v14  ;;  %s165_s0 = smov 14   ;;  %s166_s9 = smov 7   ;;  %vm70_vm5 = vcmask 228520  }
   0x9   :  { %v5_v20 = vsel %vm4_vm0, %v3_v18, %v2_v16  ;;  %vm86_vm6 = vcmask 171120   ;;  %vm102_vm7 = vcmask 113720  }
   0xa   :  { %7 = vst.msk [vmem:[#allocation0] sm:$0x3] %vm6_vm1, %v5_v20   ;;  %9 = vst.msk [vmem:[#allocation0 + $0x6] sm:$0xc] %vm6_vm1, %v5_v20  }
   0xb   :  { %11 = vst.msk [vmem:[#allocation0 + $0xc] sm:$0x30] %vm6_vm1, %v5_v20   ;;  %13 = vst.msk [vmem:[#allocation0 + $0x12] sm:$0xc0] %vm6_vm1, %v5_v20  }
   0xc   :  { %84 = vrot.lane.b32.xlu0 %v83_v17, %s165_s0  ;;  %100 = vrot.lane.b32.xlu1 %v99_v19, %s166_s9 }
  0x76   :  { %v21_v21 = vpop.permute.xlu0 %20   ;;  %v53_v22 = vpop.permute.xlu1 %52  }
  0x77   :  { %23 = vst.msk [vmem:[#allocation0] sm:$0x3] %vm22_vm2, %v21_v21   ;;  %25 = vst.msk [vmem:[#allocation0 + $0x6] sm:$0xc] %vm22_vm2, %v21_v21  }
  0x78   :  { %27 = vst.msk [vmem:[#allocation0 + $0xc] sm:$0x30] %vm22_vm2, %v21_v21   ;;  %29 = vst.msk [vmem:[#allocation0 + $0x12] sm:$0xc0] %vm22_vm2, %v21_v21  }
  0x7a   :  { %v37_v23 = vpop.permute.xlu0 %36   ;;  %v69_v24 = vpop.permute.xlu1 %68  }
  0x7b   :  { %39 = vst.msk [vmem:[#allocation0] sm:$0x3] %vm38_vm3, %v37_v23   ;;  %41 = vst.msk [vmem:[#allocation0 + $0x6] sm:$0xc] %vm38_vm3, %v37_v23  }
  0x7c   :  { %43 = vst.msk [vmem:[#allocation0 + $0xc] sm:$0x30] %vm38_vm3, %v37_v23   ;;  %45 = vst.msk [vmem:[#allocation0 + $0x12] sm:$0xc0] %vm38_vm3, %v37_v23  }
  0x7d   :  { %55 = vst.msk [vmem:[#allocation0] sm:$0x3] %vm54_vm4, %v53_v22   ;;  %57 = vst.msk [vmem:[#allocation0 + $0x6] sm:$0xc] %vm54_vm4, %v53_v22  }
  0x7e   :  { %59 = vst.msk [vmem:[#allocation0 + $0xc] sm:$0x30] %vm54_vm4, %v53_v22   ;;  %61 = vst.msk [vmem:[#allocation0 + $0x12] sm:$0xc0] %vm54_vm4, %v53_v22   ;;  %v85_v25 = vpop.permute.xlu0 %84   ;;  %v101_v26 = vpop.permute.xlu1 %100  }
  0x7f   :  { %71 = vst.msk [vmem:[#allocation0] sm:$0x3] %vm70_vm5, %v69_v24   ;;  %73 = vst.msk [vmem:[#allocation0 + $0x6] sm:$0xc] %vm70_vm5, %v69_v24  }
  0x80   :  { %75 = vst.msk [vmem:[#allocation0 + $0xc] sm:$0x30] %vm70_vm5, %v69_v24   ;;  %77 = vst.msk [vmem:[#allocation0 + $0x12] sm:$0xc0] %vm70_vm5, %v69_v24  }
  0x81   :  { %87 = vst.msk [vmem:[#allocation0] sm:$0x3] %vm86_vm6, %v85_v25   ;;  %89 = vst.msk [vmem:[#allocation0 + $0x6] sm:$0xc] %vm86_vm6, %v85_v25  }
  0x82   :  { %91 = vst.msk [vmem:[#allocation0 + $0xc] sm:$0x30] %vm86_vm6, %v85_v25   ;;  %93 = vst.msk [vmem:[#allocation0 + $0x12] sm:$0xc0] %vm86_vm6, %v85_v25  }
  0x83   :  { %103 = vst.msk [vmem:[#allocation0] sm:$0x3] %vm102_vm7, %v101_v26   ;;  %105 = vst.msk [vmem:[#allocation0 + $0x6] sm:$0xc] %vm102_vm7, %v101_v26  }
  0x84   :  { %107 = vst.msk [vmem:[#allocation0 + $0xc] sm:$0x30] %vm102_vm7, %v101_v26   ;;  %109 = vst.msk [vmem:[#allocation0 + $0x12] sm:$0xc0] %vm102_vm7, %v101_v26  }
  0x8a   :  { %v114_v27 = vld [vmem:[#allocation0] sm:$0x3]  ;;  %v119_v28 = vld [vmem:[#allocation0 + $0x8] sm:$0x3] }
  0x8b   :  { %v125_v29 = vld [vmem:[#allocation0 + $0x10] sm:$0x3]  ;;  %117 = vst [vmem:[%s239_s1] sm:$0x3] %v114_v27  ;;  %152 = vst [vmem:[%s239_s1 + $0x2] sm:$0x3] %v119_v28 }
  0x8c   :  { %153 = vst [vmem:[%s239_s1 + $0x4] sm:$0x3] %v125_v29  ;;  %v132_v30 = vld [vmem:[#allocation0 + $0x18] sm:$0x3] }
  0x8d   :  { %154 = vst [vmem:[%s239_s1 + $0x6] sm:$0x3] %v132_v30 }

// kernel: ccsoft_forward.1
= control target key start
LH: loop header
LB: loop body
LE: loop exit
PB: predicated region body
PF: predicated region fallthrough
CT: control target
= control target key end

     0   :  { %v27_v0 = vlaneseq  ;;  %v550_v1 = vmov 1966171168   ;;  %vm513_vm0 = vcmask 399360   ;;  %s746_s1 = inlined_call_operand.vmem [shape: f32[4,2,7], index: 1, kind: input, shape index: {}]   ;;  %s747_s0 = inlined_call_operand.vmem [shape: f32[4,2,7], index: 0, kind: input, shape index: {}]   ;;  %s748_s2 = inlined_call_operand.vmem [shape: f32[4,2,49], index: 2, kind: input, shape index: {}]   ;;  %s749_s3 = inlined_call_operand.vmem [shape: f32[4,2,49], index: 3, kind: input, shape index: {}]   ;;  %s750_s4 = inlined_call_operand.vmem [shape: f32[4,7,49], index: 4, kind: input, shape index: {}]   ;;  %s751_s5 = inlined_call_operand.vmem [shape: f32[2,7,49], index: 5, kind: output, shape index: {0}]   ;;  %s752_s6 = inlined_call_operand.vmem [shape: f32[2,7,49], index: 6, kind: output, shape index: {1}]  }
   0x1   :  { %v51_v2 = vunpack.c.l.s4 %v550_v1  ;;  %v23_v4 = vld [vmem:[%s746_s1] sm:$0x3]  ;;  %v528_v9 = vld [vmem:[%s747_s0 + $0x2] sm:$0x3]  ;;  %v535_v51 = vld [vmem:[%s747_s0 + $0x4] sm:$0x3] }
   0x2   :  { %v28_v3 = vshrl.u32 %v27_v0, 7  ;;  %v22_v5 = vld [vmem:[%s747_s0] sm:$0x3]  ;;  %v529_v13 = vld [vmem:[%s746_s1 + $0x2] sm:$0x3] }
   0x3   :  { %v52_v6 = vunpack.c.0.s8 %v51_v2  ;;  %v526_v10 = vld.sshfl [vmem:[%s748_s2] sm:$0x11 pattern:$0x75316420] }
   0x4   :  { %v592_v7 = vsub.s32 0, %v28_v3  ;;  %v594_v8 = vsub.s32 1, %v28_v3  ;;  %v527_v14 = vld.sshfl [vmem:[%s749_s3] sm:$0x11 pattern:$0x75316420]  ;;  %v49_v16 = vcombine.high %v526_v10, %v526_v10 }
   0x5   :  { %v55_v15 = vsub.s32 %v52_v6, %v28_v3  ;;  %v533_v17 = vld.sshfl [vmem:[%s748_s2 + $0x2] sm:$0x11 pattern:$0x75316420]  ;;  %v98_v29 = vcombine.high %v527_v14, %v527_v14 }
   0x6   :  { %v79_v11 = vrot.slane %v23_v4, %v592_v7  ;;  %v30_v12 = vrot.slane %v22_v5, %v592_v7  ;;  %v86_v18 = vrot.slane %v23_v4, %v594_v8  ;;  %v37_v19 = vrot.slane %v22_v5, %v594_v8  ;;  %v534_v20 = vld.sshfl [vmem:[%s749_s3 + $0x2] sm:$0x11 pattern:$0x75316420]  ;;  %v536_v5 = vld [vmem:[%s746_s1 + $0x4] sm:$0x3] }
   0x7   :  { %v161_v21 = vrot.slane %v528_v9, %v594_v8  ;;  %v154_v22 = vrot.slane %v528_v9, %v592_v7  ;;  %v210_v23 = vrot.slane %v529_v13, %v594_v8  ;;  %v203_v24 = vrot.slane %v529_v13, %v592_v7  ;;  %v540_v28 = vld.sshfl [vmem:[%s748_s2 + $0x4] sm:$0x11 pattern:$0x75316420] }
   0x8   :  { %81 = vbcast.lane.b32.xlu1 %v79_v11, 256  ;;  %32 = vbcast.lane.b32.xlu0 %v30_v12, 256  ;;  %v56_v25 = vrot.slane %v526_v10, %v55_v15  ;;  %v105_v26 = vrot.slane %v527_v14, %v55_v15  ;;  %v63_v27 = vrot.slane %v49_v16, %v55_v15  ;;  %v541_v33 = vld.sshfl [vmem:[%s749_s3 + $0x4] sm:$0x11 pattern:$0x75316420] }
   0x9   :  { %v173_v30 = vcombine.high %v533_v17, %v533_v17  ;;  %v222_v31 = vcombine.high %v534_v20, %v534_v20  ;;  %v180_v32 = vrot.slane %v533_v17, %v55_v15  ;;  %v112_v37 = vrot.slane %v98_v29, %v55_v15  ;;  %v547_v41 = vld.sshfl [vmem:[%s748_s2 + $0x6] sm:$0x11 pattern:$0x75316420] }
   0xa   :  { %v67_v34 = vrot.slane %v56_v25, %v592_v7  ;;  %v116_v35 = vrot.slane %v105_v26, %v592_v7  ;;  %v631_v36 = vrot.slane %v63_v27, %v592_v7  ;;  %v229_v42 = vrot.slane %v534_v20, %v55_v15  ;;  %v548_v46 = vld.sshfl [vmem:[%s749_s3 + $0x6] sm:$0x11 pattern:$0x75316420] }
   0xb   :  { %v187_v38 = vrot.slane %v173_v30, %v55_v15  ;;  %v236_v39 = vrot.slane %v222_v31, %v55_v15  ;;  %v634_v40 = vrot.slane %v180_v32, %v592_v7  ;;  %v297_v43 = vcombine.high %v540_v28, %v540_v28  ;;  %v542_v12 = vld [vmem:[%s747_s0 + $0x6] sm:$0x3] }
   0xc   :  { %88 = vbcast.lane.b32.xlu1 %v86_v18, 256  ;;  %39 = vbcast.lane.b32.xlu0 %v37_v19, 256  ;;  %v346_v44 = vcombine.high %v541_v33, %v541_v33  ;;  %v304_v45 = vrot.slane %v540_v28, %v55_v15  ;;  %v120_v47 = vrot.slane %v112_v37, %v592_v7 }
   0xd   :  { %v644_v48 = vrot.slane %v187_v38, %v592_v7  ;;  %v647_v49 = vrot.slane %v236_v39, %v592_v7  ;;  %v353_v50 = vrot.slane %v541_v33, %v55_v15  ;;  %v653_v52 = vrot.slane %v229_v42, %v592_v7  ;;  %v26_v42 = vld [vmem:[%s750_s4] sm:$0x7f] }
   0xe   :  { %v311_v53 = vrot.slane %v297_v43, %v55_v15  ;;  %v360_v54 = vrot.slane %v346_v44, %v55_v15  ;;  %v656_v55 = vrot.slane %v304_v45, %v592_v7  ;;  %v421_v57 = vcombine.high %v547_v41, %v547_v41 }
   0xf   :  { %v659_v56 = vrot.slane %v353_v50, %v592_v7  ;;  %v470_v58 = vcombine.high %v548_v46, %v548_v46  ;;  %v428_v61 = vrot.slane %v547_v41, %v55_v15  ;;  %v477_v62 = vrot.slane %v548_v46, %v55_v15  ;;  %v532_v46 = vld [vmem:[%s750_s4 + $0x8] sm:$0x7f] }
  0x10   :  { %163 = vbcast.lane.b32.xlu1 %v161_v21, 256  ;;  %156 = vbcast.lane.b32.xlu0 %v154_v22, 256  ;;  %v662_v59 = vrot.slane %v311_v53, %v592_v7  ;;  %v665_v60 = vrot.slane %v360_v54, %v592_v7  ;;  %v285_v63 = vrot.slane %v535_v51, %v594_v8 }
  0x11   :  { %v435_v0 = vrot.slane %v421_v57, %v55_v15  ;;  %v484_v1 = vrot.slane %v470_v58, %v55_v15  ;;  %v278_v2 = vrot.slane %v535_v51, %v592_v7  ;;  %v670_v3 = vrot.slane %v428_v61, %v592_v7  ;;  %v543_v15 = vld [vmem:[%s746_s1 + $0x6] sm:$0x3] }
  0x12   :  { %v673_v4 = vrot.slane %v477_v62, %v592_v7  ;;  %v334_v10 = vrot.slane %v536_v5, %v594_v8  ;;  %v327_v11 = vrot.slane %v536_v5, %v592_v7  ;;  %v409_v13 = vrot.slane %v542_v12, %v594_v8 }
  0x13   :  { %v679_v6 = vrot.slane %v435_v0, %v592_v7  ;;  %v682_v9 = vrot.slane %v484_v1, %v592_v7  ;;  %v402_v14 = vrot.slane %v542_v12, %v592_v7  ;;  %v458_v16 = vrot.slane %v543_v15, %v594_v8 }
  0x14   :  { %212 = vbcast.lane.b32.xlu1 %v210_v23, 256  ;;  %205 = vbcast.lane.b32.xlu0 %v203_v24, 256  ;;  %v451_v17 = vrot.slane %v543_v15, %v592_v7 }
  0x18   :  { %287 = vbcast.lane.b32.xlu1 %v285_v63, 256  ;;  %280 = vbcast.lane.b32.xlu0 %v278_v2, 256 }
  0x1c   :  { %336 = vbcast.lane.b32.xlu1 %v334_v10, 256  ;;  %329 = vbcast.lane.b32.xlu0 %v327_v11, 256 }
  0x20   :  { %411 = vbcast.lane.b32.xlu1 %v409_v13, 256  ;;  %404 = vbcast.lane.b32.xlu0 %v402_v14, 256 }
  0x24   :  { %460 = vbcast.lane.b32.xlu1 %v458_v16, 256  ;;  %453 = vbcast.lane.b32.xlu0 %v451_v17, 256 }
  0x7a   :  { %v82_v18 = vpop.permute.xlu1 %81  ;;  %v33_v19 = vpop.permute.xlu0 %32 }
  0x7b   :  { %v123_v20 = vmul.f32 %v116_v35, %v82_v18  ;;  %v127_v21 = vmul.f32 %v82_v18, %v67_v34  ;;  %v74_v22 = vmul.f32 %v67_v34, %v33_v19  ;;  %v129_v23 = vmul.f32 %v116_v35, %v33_v19 }
  0x7d   :  { %v125_v24 = vadd.f32 %v123_v20, %v74_v22  ;;  %v131_v25 = vsub.f32 %v127_v21, %v129_v23  ;;  %v539_v20 = vld [vmem:[%s750_s4 + $0x10] sm:$0x7f] }
  0x7e   :  { %v89_v26 = vpop.permute.xlu1 %88  ;;  %v40_v27 = vpop.permute.xlu0 %39 }
  0x7f   :  { %v124_v28 = vmul.f32 %v120_v47, %v89_v26  ;;  %v128_v29 = vmul.f32 %v89_v26, %v631_v36  ;;  %v75_v30 = vmul.f32 %v631_v36, %v40_v27  ;;  %v130_v8 = vmul.f32 %v120_v47, %v40_v27 }
  0x80   :  { %v133_v54 = vmul.f32 %v125_v24, %v26_v42  ;;  %v137_v57 = vmul.f32 %v131_v25, %v26_v42 }
  0x81   :  { %v126_v31 = vadd.f32 %v124_v28, %v75_v30  ;;  %v132_v7 = vsub.f32 %v128_v29, %v130_v8 }
  0x82   :  { %v164_v32 = vpop.permute.xlu1 %163  ;;  %v157_v33 = vpop.permute.xlu0 %156 }
  0x83   :  { %v199_v37 = vmul.f32 %v644_v48, %v164_v32  ;;  %v254_v38 = vmul.f32 %v647_v49, %v164_v32  ;;  %v198_v34 = vmul.f32 %v634_v40, %v157_v33  ;;  %v253_v35 = vmul.f32 %v653_v52, %v157_v33 }
  0x84   :  { %v134_v58 = vmul.f32 %v126_v31, %v26_v42  ;;  %v138_v61 = vmul.f32 %v132_v7, %v26_v42 }
  0x86   :  { %v213_v39 = vpop.permute.xlu1 %212  ;;  %v206_v41 = vpop.permute.xlu0 %205 }
  0x87   :  { %v248_v36 = vmul.f32 %v647_v49, %v213_v39  ;;  %v252_v43 = vmul.f32 %v213_v39, %v644_v48  ;;  %v247_v44 = vmul.f32 %v653_v52, %v206_v41  ;;  %v251_v45 = vmul.f32 %v206_v41, %v634_v40  ;;  %v546_v41 = vld [vmem:[%s750_s4 + $0x18] sm:$0x7f] }
  0x89   :  { %v250_v47 = vadd.f32 %v248_v36, %v199_v37  ;;  %v256_v50 = vsub.f32 %v252_v43, %v254_v38  ;;  %v249_v51 = vadd.f32 %v247_v44, %v198_v34  ;;  %v255_v53 = vsub.f32 %v251_v45, %v253_v35 }
  0x8a   :  { %v288_v62 = vpop.permute.xlu1 %287  ;;  %v281_v49 = vpop.permute.xlu0 %280 }
  0x8b   :  { %v258_v63 = vmul.f32 %v532_v46, %v250_v47  ;;  %v262_v48 = vmul.f32 %v532_v46, %v256_v50  ;;  %v257_v0 = vmul.f32 %v532_v46, %v249_v51  ;;  %v261_v52 = vmul.f32 %v532_v46, %v255_v53 }
  0x8c   :  { %v323_v10 = vmul.f32 %v662_v59, %v288_v62  ;;  %v378_v11 = vmul.f32 %v665_v60, %v288_v62  ;;  %v322_v12 = vmul.f32 %v656_v55, %v281_v49  ;;  %v377_v13 = vmul.f32 %v659_v56, %v281_v49 }
  0x8d   :  { %v260_v1 = vadd.f32 %v258_v63, %v134_v58  ;;  %v264_v40 = vadd.f32 %v262_v48, %v138_v61  ;;  %v259_v2 = vadd.f32 %v257_v0, %v133_v54  ;;  %v263_v5 = vadd.f32 %v261_v52, %v137_v57 }
  0x8e   :  { %v337_v14 = vpop.permute.xlu1 %336  ;;  %v330_v15 = vpop.permute.xlu0 %329 }
  0x8f   :  { %v372_v16 = vmul.f32 %v665_v60, %v337_v14  ;;  %v376_v17 = vmul.f32 %v337_v14, %v662_v59  ;;  %v371_v18 = vmul.f32 %v659_v56, %v330_v15  ;;  %v375_v19 = vmul.f32 %v330_v15, %v656_v55 }
  0x91   :  { %v374_v21 = vadd.f32 %v372_v16, %v323_v10  ;;  %v380_v22 = vsub.f32 %v376_v17, %v378_v11  ;;  %v373_v23 = vadd.f32 %v371_v18, %v322_v12  ;;  %v379_v24 = vsub.f32 %v375_v19, %v377_v13 }
  0x92   :  { %v412_v25 = vpop.permute.xlu1 %411  ;;  %v405_v26 = vpop.permute.xlu0 %404 }
  0x93   :  { %v382_v27 = vmul.f32 %v539_v20, %v374_v21  ;;  %v386_v28 = vmul.f32 %v539_v20, %v380_v22  ;;  %v381_v29 = vmul.f32 %v539_v20, %v373_v23  ;;  %v385_v60 = vmul.f32 %v539_v20, %v379_v24 }
  0x94   :  { %v447_v55 = vmul.f32 %v679_v6, %v412_v25  ;;  %v502_v31 = vmul.f32 %v682_v9, %v412_v25  ;;  %v446_v7 = vmul.f32 %v670_v3, %v405_v26  ;;  %v501_v32 = vmul.f32 %v673_v4, %v405_v26 }
  0x95   :  { %v384_v30 = vadd.f32 %v382_v27, %v260_v1  ;;  %v388_v59 = vadd.f32 %v386_v28, %v264_v40  ;;  %v383_v8 = vadd.f32 %v381_v29, %v259_v2  ;;  %v387_v56 = vadd.f32 %v385_v60, %v263_v5 }
  0x96   :  { %v461_v33 = vpop.permute.xlu1 %460  ;;  %v454_v37 = vpop.permute.xlu0 %453 }
  0x97   :  { %v496_v38 = vmul.f32 %v682_v9, %v461_v33  ;;  %v500_v34 = vmul.f32 %v461_v33, %v679_v6  ;;  %v495_v35 = vmul.f32 %v673_v4, %v454_v37  ;;  %v499_v39 = vmul.f32 %v454_v37, %v670_v3 }
  0x99   :  { %v498_v42 = vadd.f32 %v496_v38, %v447_v55  ;;  %v504_v36 = vsub.f32 %v500_v34, %v502_v31  ;;  %v497_v43 = vadd.f32 %v495_v35, %v446_v7  ;;  %v503_v44 = vsub.f32 %v499_v39, %v501_v32 }
  0x9b   :  { %v506_v45 = vmul.f32 %v546_v41, %v498_v42  ;;  %v510_v46 = vmul.f32 %v546_v41, %v504_v36  ;;  %v505_v47 = vmul.f32 %v546_v41, %v497_v43  ;;  %v509_v50 = vmul.f32 %v546_v41, %v503_v44 }
  0x9d   :  { %v508_v9 = vadd.f32 %v506_v45, %v384_v30  ;;  %v512_v51 = vadd.f32 %v510_v46, %v388_v59  ;;  %v507_v6 = vadd.f32 %v505_v47, %v383_v8  ;;  %v511_v53 = vadd.f32 %v509_v50, %v387_v56 }
  0x9f   :  { %515 = vst.msk [vmem:[%s751_s5 + $0x8] sm:$0x7f] %vm513_vm0, %v508_v9  ;;  %517 = vst.msk [vmem:[%s752_s6 + $0x8] sm:$0x7f] %vm513_vm0, %v512_v51 }
  0xa0   :  { %514 = vst.msk [vmem:[%s751_s5] sm:$0x7f] %vm513_vm0, %v507_v6  ;;  %516 = vst.msk [vmem:[%s752_s6] sm:$0x7f] %vm513_vm0, %v511_v53 }

// kernel: custom-call.4
= control target key start
LH: loop header
LB: loop body
LE: loop exit
PB: predicated region body
PF: predicated region fallthrough
CT: control target
= control target key end

     0   :  { %s362_s0 = inlined_call_operand.vmem [shape: f32[2,7,7,7], index: 0, kind: input, shape index: {}]   ;;  %s363_s2 = inlined_call_operand.vmem [shape: c64[2,7,7,7], index: 2, kind: output, shape index: {}]   ;;  %s364_s1 = inlined_call_operand.vmem [shape: f32[2,7,7,7], index: 1, kind: input, shape index: {}]  }
   0x1   :  { %v5_v0 = vld [vmem:[%s362_s0] sm:$0xff]  ;;  %v126_v1 = vld [vmem:[%s362_s0 + $0x8] sm:$0xff]  ;;  %v128_v2 = vld [vmem:[%s362_s0 + $0x10] sm:$0xff] }
   0x2   :  { %6 = vst [vmem:[%s363_s2] sm:$0xff] %v5_v0  ;;  %127 = vst [vmem:[%s363_s2 + $0x8] sm:$0xff] %v126_v1  ;;  %v130_v3 = vld [vmem:[%s362_s0 + $0x18] sm:$0xff]  ;;  %v132_v4 = vld [vmem:[%s362_s0 + $0x20] sm:$0xff] }
   0x3   :  { %129 = vst [vmem:[%s363_s2 + $0x10] sm:$0xff] %v128_v2  ;;  %v134_v5 = vld [vmem:[%s362_s0 + $0x28] sm:$0xff]  ;;  %131 = vst [vmem:[%s363_s2 + $0x18] sm:$0xff] %v130_v3  ;;  %v136_v6 = vld [vmem:[%s362_s0 + $0x30] sm:$0xff] }
   0x4   :  { %133 = vst [vmem:[%s363_s2 + $0x20] sm:$0xff] %v132_v4  ;;  %135 = vst [vmem:[%s363_s2 + $0x28] sm:$0xff] %v134_v5  ;;  %v138_v7 = vld [vmem:[%s362_s0 + $0x38] sm:$0xff]  ;;  %v140_v8 = vld [vmem:[%s362_s0 + $0x40] sm:$0xff] }
   0x5   :  { %137 = vst [vmem:[%s363_s2 + $0x30] sm:$0xff] %v136_v6  ;;  %139 = vst [vmem:[%s363_s2 + $0x38] sm:$0xff] %v138_v7  ;;  %v142_v9 = vld [vmem:[%s362_s0 + $0x48] sm:$0xff]  ;;  %v144_v10 = vld [vmem:[%s362_s0 + $0x50] sm:$0xff] }
   0x6   :  { %141 = vst [vmem:[%s363_s2 + $0x40] sm:$0xff] %v140_v8  ;;  %v146_v11 = vld [vmem:[%s362_s0 + $0x58] sm:$0xff]  ;;  %143 = vst [vmem:[%s363_s2 + $0x48] sm:$0xff] %v142_v9  ;;  %v148_v12 = vld [vmem:[%s362_s0 + $0x60] sm:$0xff] }
   0x7   :  { %145 = vst [vmem:[%s363_s2 + $0x50] sm:$0xff] %v144_v10  ;;  %147 = vst [vmem:[%s363_s2 + $0x58] sm:$0xff] %v146_v11  ;;  %v150_v13 = vld [vmem:[%s362_s0 + $0x68] sm:$0xff]  ;;  %v59_v14 = vld [vmem:[%s364_s1] sm:$0xff] }
   0x8   :  { %149 = vst [vmem:[%s363_s2 + $0x60] sm:$0xff] %v148_v12  ;;  %151 = vst [vmem:[%s363_s2 + $0x68] sm:$0xff] %v150_v13  ;;  %v153_v15 = vld [vmem:[%s364_s1 + $0x8] sm:$0xff]  ;;  %v155_v16 = vld [vmem:[%s364_s1 + $0x10] sm:$0xff] }
   0x9   :  { %152 = vst [vmem:[%s363_s2 + $0x70] sm:$0xff] %v59_v14  ;;  %v157_v17 = vld [vmem:[%s364_s1 + $0x18] sm:$0xff]  ;;  %154 = vst [vmem:[%s363_s2 + $0x78] sm:$0xff] %v153_v15  ;;  %v159_v18 = vld [vmem:[%s364_s1 + $0x20] sm:$0xff] }
   0xa   :  { %156 = vst [vmem:[%s363_s2 + $0x80] sm:$0xff] %v155_v16  ;;  %158 = vst [vmem:[%s363_s2 + $0x88] sm:$0xff] %v157_v17  ;;  %v161_v19 = vld [vmem:[%s364_s1 + $0x28] sm:$0xff]  ;;  %v163_v20 = vld [vmem:[%s364_s1 + $0x30] sm:$0xff] }
   0xb   :  { %160 = vst [vmem:[%s363_s2 + $0x90] sm:$0xff] %v159_v18  ;;  %162 = vst [vmem:[%s363_s2 + $0x98] sm:$0xff] %v161_v19  ;;  %v165_v21 = vld [vmem:[%s364_s1 + $0x38] sm:$0xff]  ;;  %v167_v22 = vld [vmem:[%s364_s1 + $0x40] sm:$0xff] }
   0xc   :  { %164 = vst [vmem:[%s363_s2 + $0xa0] sm:$0xff] %v163_v20  ;;  %v169_v23 = vld [vmem:[%s364_s1 + $0x48] sm:$0xff]  ;;  %166 = vst [vmem:[%s363_s2 + $0xa8] sm:$0xff] %v165_v21  ;;  %v171_v24 = vld [vmem:[%s364_s1 + $0x50] sm:$0xff] }
   0xd   :  { %168 = vst [vmem:[%s363_s2 + $0xb0] sm:$0xff] %v167_v22  ;;  %170 = vst [vmem:[%s363_s2 + $0xb8] sm:$0xff] %v169_v23  ;;  %v173_v25 = vld [vmem:[%s364_s1 + $0x58] sm:$0xff]  ;;  %v175_v26 = vld [vmem:[%s364_s1 + $0x60] sm:$0xff] }
   0xe   :  { %172 = vst [vmem:[%s363_s2 + $0xc0] sm:$0xff] %v171_v24  ;;  %174 = vst [vmem:[%s363_s2 + $0xc8] sm:$0xff] %v173_v25  ;;  %v177_v27 = vld [vmem:[%s364_s1 + $0x68] sm:$0xff] }
   0xf   :  { %176 = vst [vmem:[%s363_s2 + $0xd0] sm:$0xff] %v175_v26  ;;  %178 = vst [vmem:[%s363_s2 + $0xd8] sm:$0xff] %v177_v27 }

</bundles_post_ra>
